<compile_context>
chip_gen: v7x
topology: tpu7x:2x2x1
jax: 0.10.0
libtpu: 0.0.40
codegen_flags: <defaults>
</compile_context>

<pallas_src>
import jax
import jax.numpy as jnp
from jax.experimental import pallas as pl
from jax.experimental.pallas import tpu as pltpu

BN_EPS = 1e-5
VMEM_LIMIT_BYTES = 32 * 1024 * 1024  # safe on v5e/v6e (128 MiB phys) and v7x (64 MiB phys)


def _pick_hw_tile(hw, cap=1024):
    """Largest HW tile <= cap that divides hw and is a multiple of 128 (else full extent)."""
    if hw % 128 != 0:
        return hw
    t = min(hw, cap)
    t -= t % 128
    while hw % t != 0:
        t -= 128
    return t


def _make_pass1_kernel(cin, use_mxu):
    """conv1x1 + bias + ReLU, plus per-channel sum / sum-of-squares accumulation."""

    def kernel(x_ref, w_ref, b_ref, y_ref, sum_ref, sumsq_ref):
        # x_ref:   (Cin, T)    one batch image's HW tile, channels on sublanes
        # w_ref:   (Cout, Cin) conv weight (PyTorch orientation, 1x1 kernel squeezed)
        # b_ref:   (Cout, 1)   conv bias
        # y_ref:   (Cout, T)   relu(conv) output tile
        # sum_ref, sumsq_ref: (Cout, 1) accumulators (same block revisited over whole grid)
        first = (pl.program_id(0) == 0) & (pl.program_id(1) == 0)

        @pl.when(first)
        def _():
            sum_ref[...] = jnp.zeros_like(sum_ref)
            sumsq_ref[...] = jnp.zeros_like(sumsq_ref)

        x = x_ref[...].astype(jnp.float32)
        w = w_ref[...].astype(jnp.float32)

        if use_mxu:
            # Real channel counts: MXU matmul.
            # TODO(synk): on v6e, cast operands to bf16 for large Cin/Cout to hit MXU peak.
            y = jnp.dot(w, x, preferred_element_type=jnp.float32)
        else:
            # Tiny channel counts: unrolled VPU broadcast multiply-adds (skip MXU entirely).
            y = w[:, 0:1] * x[0:1, :]
            for c in range(1, cin):
                y = y + w[:, c:c + 1] * x[c:c + 1, :]

        y = jnp.maximum(y + b_ref[...], 0.0)
        y_ref[...] = y.astype(y_ref.dtype)

        # Per-channel partial stats for BatchNorm (f32 accumulators, single sweep over y).
        sum_ref[...] += jnp.sum(y, axis=1, keepdims=True)
        sumsq_ref[...] += jnp.sum(y * y, axis=1, keepdims=True)

    return kernel


def _pass2_kernel(y_ref, scale_ref, shift_ref, o_ref):
    # Folded BatchNorm: one multiply-add per element.
    o_ref[...] = (y_ref[...] * scale_ref[...] + shift_ref[...]).astype(o_ref.dtype)


def bottleconv_forward(x_nchw, w, b, gamma, beta, *, tile_cap=1024):
    """x_nchw: (N, Cin, H, W) f32; w: (Cout, Cin); b/gamma/beta: (Cout,).  Returns (N, Cout, H, W)."""
    n, cin, h, wd = x_nchw.shape
    cout = w.shape[0]
    hw = h * wd

    x3 = x_nchw.astype(jnp.float32).reshape(n, cin, hw)  # contiguous reshape, no transpose
    w2 = w.astype(jnp.float32).reshape(cout, cin)
    b2 = b.astype(jnp.float32).reshape(cout, 1)
    g2 = gamma.astype(jnp.float32).reshape(cout, 1)
    be2 = beta.astype(jnp.float32).reshape(cout, 1)

    t = _pick_hw_tile(hw, tile_cap)
    n_tiles = hw // t
    use_mxu = cin >= 16

    # --- Pass 1: conv1x1 + ReLU, with per-channel sum / sumsq accumulation -----------------
    y, s, ss = pl.pallas_call(
        _make_pass1_kernel(cin, use_mxu),
        out_shape=(
            jax.ShapeDtypeStruct((n, cout, hw), jnp.float32),
            jax.ShapeDtypeStruct((cout, 1), jnp.float32),
            jax.ShapeDtypeStruct((cout, 1), jnp.float32),
        ),
        grid=(n, n_tiles),
        in_specs=[
            pl.BlockSpec((None, cin, t), lambda i, j: (i, 0, j)),
            pl.BlockSpec((cout, cin), lambda i, j: (0, 0)),
            pl.BlockSpec((cout, 1), lambda i, j: (0, 0)),
        ],
        out_specs=(
            pl.BlockSpec((None, cout, t), lambda i, j: (i, 0, j)),
            pl.BlockSpec((cout, 1), lambda i, j: (0, 0)),
            pl.BlockSpec((cout, 1), lambda i, j: (0, 0)),
        ),
        compiler_params=pltpu.CompilerParams(
            # Stats accumulator block is revisited across both axes -> must stay sequential.
            dimension_semantics=("arbitrary", "arbitrary"),
            vmem_limit_bytes=VMEM_LIMIT_BYTES,
        ),
    )(x3, w2, b2)

    # --- Tiny per-channel BN parameter fold (Cout-sized vectors, plain JAX) -----------------
    m = jnp.float32(n * hw)
    mean = s / m
    var = jnp.maximum(ss / m - mean * mean, 0.0)  # biased variance (PyTorch train-mode norm)
    scale = g2 * jax.lax.rsqrt(var + BN_EPS)
    shift = be2 - mean * scale

    # --- Pass 2: normalization sweep (fully parallel across batch and HW tiles) -------------
    out3 = pl.pallas_call(
        _pass2_kernel,
        out_shape=jax.ShapeDtypeStruct((n, cout, hw), jnp.float32),
        grid=(n, n_tiles),
        in_specs=[
            pl.BlockSpec((None, cout, t), lambda i, j: (i, 0, j)),
            pl.BlockSpec((cout, 1), lambda i, j: (0, 0)),
            pl.BlockSpec((cout, 1), lambda i, j: (0, 0)),
        ],
        out_specs=pl.BlockSpec((None, cout, t), lambda i, j: (i, 0, j)),
        compiler_params=pltpu.CompilerParams(
            dimension_semantics=("parallel", "parallel"),
            vmem_limit_bytes=VMEM_LIMIT_BYTES,
        ),
    )(y, scale, shift)

    return out3.reshape(n, cout, h, wd)


def reference_forward(x_nchw, w, b, gamma, beta):
    """Pure-JAX reference mirroring PyTorch semantics (conv1x1 -> relu -> BN train-mode)."""
    cout = w.shape[0]
    y = jnp.einsum("oc,nchw->nohw", w, x_nchw, precision=jax.lax.Precision.HIGHEST)
    y = y + b.reshape(1, cout, 1, 1)
    y = jnp.maximum(y, 0.0)
    mean = jnp.mean(y, axis=(0, 2, 3), keepdims=True)
    var = jnp.mean((y - mean) ** 2, axis=(0, 2, 3), keepdims=True)
    y = (y - mean) / jnp.sqrt(var + BN_EPS)
    return y * gamma.reshape(1, cout, 1, 1) + beta.reshape(1, cout, 1, 1)


if __name__ == "__main__":
    # Small shapes consistent with the module: batch=2, in_channels=4, out_channels=8, 16x16 spatial.
    N, C_IN, C_OUT, H, W = 2, 4, 8, 16, 16

    key = jax.random.PRNGKey(0)
    kx, kw, kb = jax.random.split(key, 3)

    x = jax.random.normal(kx, (N, C_IN, H, W), dtype=jnp.float32)

    # Parameters in PyTorch orientation: conv weight (Cout, Cin) (1x1 kernel squeezed), bias (Cout,).
    w = jax.random.normal(kw, (C_OUT, C_IN), dtype=jnp.float32) * 0.1
    b = jax.random.normal(kb, (C_OUT,), dtype=jnp.float32) * 0.1
    gamma = jnp.ones((C_OUT,), dtype=jnp.float32)   # BatchNorm2d default weight init
    beta = jnp.zeros((C_OUT,), dtype=jnp.float32)   # BatchNorm2d default bias init

    out = bottleconv_forward(x, w, b, gamma, beta)
    jax.block_until_ready(out)

    ref = reference_forward(x, w, b, gamma, beta)
    assert out.shape == (N, C_OUT, H, W)
    assert jnp.allclose(out, ref, atol=2e-4, rtol=2e-4), float(jnp.max(jnp.abs(out - ref)))

    print("KERNEL_OK")
</pallas_src>

<mosaic_0001>
module attributes {stable_mosaic.version = 11 : i64} {
  func.func @kernel(%arg0: i32, %arg1: i32, %arg2: memref<1x4x256xf32, #tpu.memory_space<vmem>>, %arg3: memref<8x4xf32, #tpu.memory_space<vmem>>, %arg4: memref<8x1xf32, #tpu.memory_space<vmem>>, %arg5: memref<1x8x256xf32, #tpu.memory_space<vmem>>, %arg6: memref<8x1xf32, #tpu.memory_space<vmem>>, %arg7: memref<8x1xf32, #tpu.memory_space<vmem>>) attributes {dimension_semantics = [#tpu.dimension_semantics<arbitrary>, #tpu.dimension_semantics<arbitrary>], iteration_bounds = array<i64: 2, 1>, scalar_prefetch = 0 : i64, scratch_operands = 0 : i64, tpu.core_type = #tpu.core_type<tc>, window_params = [{transform_indices = @transform_0, window_bounds = array<i64: 1, 4, 256>}, {pipeline_mode = #tpu.pipeline_mode<synchronous>, transform_indices = @transform_1, window_bounds = array<i64: 8, 4>}, {pipeline_mode = #tpu.pipeline_mode<synchronous>, transform_indices = @transform_2, window_bounds = array<i64: 8, 1>}, {transform_indices = @transform_3, window_bounds = array<i64: 1, 8, 256>}, {pipeline_mode = #tpu.pipeline_mode<synchronous>, transform_indices = @transform_4, window_bounds = array<i64: 8, 1>}, {pipeline_mode = #tpu.pipeline_mode<synchronous>, transform_indices = @transform_5, window_bounds = array<i64: 8, 1>}]} {
    %c0_i32 = arith.constant 0 : i32
    %0 = arith.cmpi eq, %arg0, %c0_i32 : i32
    %c0_i32_0 = arith.constant 0 : i32
    %1 = arith.cmpi eq, %arg1, %c0_i32_0 : i32
    %2 = arith.andi %0, %1 : i1
    %3 = arith.extui %2 : i1 to i32
    %c0_i32_1 = arith.constant 0 : i32
    %4 = arith.cmpi ne, %3, %c0_i32_1 : i32
    scf.if %4 {
      %cst_21 = arith.constant 0.000000e+00 : f32
      %50 = vector.broadcast %cst_21 : f32 to vector<8x1xf32>
      %c0_22 = arith.constant 0 : index
      %c0_23 = arith.constant 0 : index
      %51 = vector.load %arg6[%c0_22, %c0_23] : memref<8x1xf32, #tpu.memory_space<vmem>>, vector<8x1xf32>
      tpu.vector_store %arg6[%c0_22, %c0_23], %50 {strides = array<i32>} : memref<8x1xf32, #tpu.memory_space<vmem>>, vector<8x1xf32>,
      %cst_24 = arith.constant 0.000000e+00 : f32
      %52 = vector.broadcast %cst_24 : f32 to vector<8x1xf32>
      %c0_25 = arith.constant 0 : index
      %c0_26 = arith.constant 0 : index
      %53 = vector.load %arg7[%c0_25, %c0_26] : memref<8x1xf32, #tpu.memory_space<vmem>>, vector<8x1xf32>
      tpu.vector_store %arg7[%c0_25, %c0_26], %52 {strides = array<i32>} : memref<8x1xf32, #tpu.memory_space<vmem>>, vector<8x1xf32>,
    } else {
    }
    %c0 = arith.constant 0 : index
    %c0_2 = arith.constant 0 : index
    %c0_3 = arith.constant 0 : index
    %5 = vector.load %arg2[%c0, %c0_2, %c0_3] : memref<1x4x256xf32, #tpu.memory_space<vmem>>, vector<1x4x256xf32>
    %6 = vector.shape_cast %5 : vector<1x4x256xf32> to vector<4x256xf32>
    %c0_4 = arith.constant 0 : index
    %c0_5 = arith.constant 0 : index
    %7 = vector.load %arg3[%c0_4, %c0_5] : memref<8x4xf32, #tpu.memory_space<vmem>>, vector<8x4xf32>
    %8 = vector.extract_strided_slice %7 {offsets = [0, 0], sizes = [8, 1], strides = [1, 1]} : vector<8x4xf32> to vector<8x1xf32>
    %9 = vector.extract_strided_slice %6 {offsets = [0, 0], sizes = [1, 256], strides = [1, 1]} : vector<4x256xf32> to vector<1x256xf32>
    %10 = vector.broadcast %8 : vector<8x1xf32> to vector<8x256xf32>
    %11 = vector.broadcast %9 : vector<1x256xf32> to vector<8x256xf32>
    %12 = arith.mulf %10, %11 : vector<8x256xf32>
    %13 = vector.extract_strided_slice %7 {offsets = [0, 1], sizes = [8, 1], strides = [1, 1]} : vector<8x4xf32> to vector<8x1xf32>
    %14 = vector.extract_strided_slice %6 {offsets = [1, 0], sizes = [1, 256], strides = [1, 1]} : vector<4x256xf32> to vector<1x256xf32>
    %15 = vector.broadcast %13 : vector<8x1xf32> to vector<8x256xf32>
    %16 = vector.broadcast %14 : vector<1x256xf32> to vector<8x256xf32>
    %17 = arith.mulf %15, %16 : vector<8x256xf32>
    %18 = arith.addf %12, %17 : vector<8x256xf32>
    %19 = vector.extract_strided_slice %7 {offsets = [0, 2], sizes = [8, 1], strides = [1, 1]} : vector<8x4xf32> to vector<8x1xf32>
    %20 = vector.extract_strided_slice %6 {offsets = [2, 0], sizes = [1, 256], strides = [1, 1]} : vector<4x256xf32> to vector<1x256xf32>
    %21 = vector.broadcast %19 : vector<8x1xf32> to vector<8x256xf32>
    %22 = vector.broadcast %20 : vector<1x256xf32> to vector<8x256xf32>
    %23 = arith.mulf %21, %22 : vector<8x256xf32>
    %24 = arith.addf %18, %23 : vector<8x256xf32>
    %25 = vector.extract_strided_slice %7 {offsets = [0, 3], sizes = [8, 1], strides = [1, 1]} : vector<8x4xf32> to vector<8x1xf32>
    %26 = vector.extract_strided_slice %6 {offsets = [3, 0], sizes = [1, 256], strides = [1, 1]} : vector<4x256xf32> to vector<1x256xf32>
    %27 = vector.broadcast %25 : vector<8x1xf32> to vector<8x256xf32>
    %28 = vector.broadcast %26 : vector<1x256xf32> to vector<8x256xf32>
    %29 = arith.mulf %27, %28 : vector<8x256xf32>
    %30 = arith.addf %24, %29 : vector<8x256xf32>
    %c0_6 = arith.constant 0 : index
    %c0_7 = arith.constant 0 : index
    %31 = vector.load %arg4[%c0_6, %c0_7] : memref<8x1xf32, #tpu.memory_space<vmem>>, vector<8x1xf32>
    %32 = vector.broadcast %31 : vector<8x1xf32> to vector<8x256xf32>
    %33 = arith.addf %30, %32 : vector<8x256xf32>
    %cst = arith.constant 0.000000e+00 : f32
    %34 = vector.broadcast %cst : f32 to vector<8x256xf32>
    %35 = arith.maximumf %33, %34 : vector<8x256xf32>
    %c0_8 = arith.constant 0 : index
    %c0_9 = arith.constant 0 : index
    %c0_10 = arith.constant 0 : index
    %36 = vector.load %arg5[%c0_8, %c0_9, %c0_10] : memref<1x8x256xf32, #tpu.memory_space<vmem>>, vector<1x8x256xf32>
    %37 = vector.shape_cast %36 : vector<1x8x256xf32> to vector<8x256xf32>
    %38 = vector.shape_cast %35 : vector<8x256xf32> to vector<1x8x256xf32>
    tpu.vector_store %arg5[%c0_8, %c0_9, %c0_10], %38 {strides = array<i32>} : memref<1x8x256xf32, #tpu.memory_space<vmem>>, vector<1x8x256xf32>,
    %c0_11 = arith.constant 0 : index
    %c0_12 = arith.constant 0 : index
    %39 = vector.load %arg6[%c0_11, %c0_12] : memref<8x1xf32, #tpu.memory_space<vmem>>, vector<8x1xf32>
    %cst_13 = arith.constant dense<0.000000e+00> : vector<8xf32>
    %40 = vector.multi_reduction <add>, %35, %cst_13 [1] : vector<8x256xf32> to vector<8xf32>
    %41 = vector.shape_cast %40 : vector<8xf32> to vector<8x1xf32>
    %42 = arith.addf %39, %41 : vector<8x1xf32>
    %c0_14 = arith.constant 0 : index
    %c0_15 = arith.constant 0 : index
    %43 = vector.load %arg6[%c0_14, %c0_15] : memref<8x1xf32, #tpu.memory_space<vmem>>, vector<8x1xf32>
    tpu.vector_store %arg6[%c0_14, %c0_15], %42 {strides = array<i32>} : memref<8x1xf32, #tpu.memory_space<vmem>>, vector<8x1xf32>,
    %c0_16 = arith.constant 0 : index
    %c0_17 = arith.constant 0 : index
    %44 = vector.load %arg7[%c0_16, %c0_17] : memref<8x1xf32, #tpu.memory_space<vmem>>, vector<8x1xf32>
    %45 = arith.mulf %35, %35 : vector<8x256xf32>
    %cst_18 = arith.constant dense<0.000000e+00> : vector<8xf32>
    %46 = vector.multi_reduction <add>, %45, %cst_18 [1] : vector<8x256xf32> to vector<8xf32>
    %47 = vector.shape_cast %46 : vector<8xf32> to vector<8x1xf32>
    %48 = arith.addf %44, %47 : vector<8x1xf32>
    %c0_19 = arith.constant 0 : index
    %c0_20 = arith.constant 0 : index
    %49 = vector.load %arg7[%c0_19, %c0_20] : memref<8x1xf32, #tpu.memory_space<vmem>>, vector<8x1xf32>
    tpu.vector_store %arg7[%c0_19, %c0_20], %48 {strides = array<i32>} : memref<8x1xf32, #tpu.memory_space<vmem>>, vector<8x1xf32>,
    return
  }
  func.func @transform_0(%arg0: i32, %arg1: i32) -> (i32, i32, i32) {
    %c0_i32 = arith.constant 0 : i32
    %c0_i32_0 = arith.constant 0 : i32
    return %arg0, %c0_i32, %arg1 : i32, i32, i32
  }
  func.func @transform_1(%arg0: i32, %arg1: i32) -> (i32, i32) {
    %c0_i32 = arith.constant 0 : i32
    %c0_i32_0 = arith.constant 0 : i32
    %c0_i32_1 = arith.constant 0 : i32
    return %c0_i32, %c0_i32_0 : i32, i32
  }
  func.func @transform_2(%arg0: i32, %arg1: i32) -> (i32, i32) {
    %c0_i32 = arith.constant 0 : i32
    %c0_i32_0 = arith.constant 0 : i32
    %c0_i32_1 = arith.constant 0 : i32
    return %c0_i32, %c0_i32_0 : i32, i32
  }
  func.func @transform_3(%arg0: i32, %arg1: i32) -> (i32, i32, i32) {
    %c0_i32 = arith.constant 0 : i32
    %c0_i32_0 = arith.constant 0 : i32
    return %arg0, %c0_i32, %arg1 : i32, i32, i32
  }
  func.func @transform_4(%arg0: i32, %arg1: i32) -> (i32, i32) {
    %c0_i32 = arith.constant 0 : i32
    %c0_i32_0 = arith.constant 0 : i32
    %c0_i32_1 = arith.constant 0 : i32
    return %c0_i32, %c0_i32_0 : i32, i32
  }
  func.func @transform_5(%arg0: i32, %arg1: i32) -> (i32, i32) {
    %c0_i32 = arith.constant 0 : i32
    %c0_i32_0 = arith.constant 0 : i32
    %c0_i32_1 = arith.constant 0 : i32
    return %c0_i32, %c0_i32_0 : i32, i32
  }
}

</mosaic_0001>

<bundles_post_ra>
// kernel: tpu_custom_call.1
= control target key start
LH: loop header
LB: loop body
LE: loop exit
PB: predicated region body
PF: predicated region fallthrough
CT: control target
= control target key end

     0   :  { %11 = vsyncpa [#allocation3], 0  ;;  %s838_s0 = inlined_call_operand.vmem [shape: f32[2,4,256], index: 0, kind: input, shape index: {}]   ;;  %s839_s1 = inlined_call_operand.vmem [shape: f32[8,4], index: 1, kind: input, shape index: {}]   ;;  %s840_s2 = inlined_call_operand.vmem [shape: f32[8,1], index: 2, kind: input, shape index: {}]   ;;  %s841_s3 = inlined_call_operand.hbm [shape: f32[2,8,256], index: 3, kind: output, shape index: {0}]   ;;  %s842_s4 = inlined_call_operand.vmem [shape: f32[8,1], index: 4, kind: output, shape index: {1}]   ;;  %s843_s5 = inlined_call_operand.vmem [shape: f32[8,1], index: 5, kind: output, shape index: {2}]  }
   0x1   :  { %13 = vsyncpa [#allocation3 + $0x1], 0  ;;  %s695_s18 = smov 0   ;;  %s697_s19 = smov 0  }
   0x2   :  { %s699_s20 = smov 0   ;;  %s701_s21 = smov 0  }
   0x3   :  { %s703_s22 = smov 0   ;;  %s705_s23 = smov 0  }
   0x4 LB: > { %s496_s24 = sadd.s32 4294967295, %s657_s23   ;;  %s497_s25 = sadd.s32 4294967294, %s657_s23   ;;  %s657_s23 = sphi %s705_s23, %s19_s23   ;;  %s653_s22 = sphi %s703_s22, %s850_s22   ;;  %s649_s21 = sphi %s701_s21, %s849_s21   ;;  %s645_s20 = sphi %s699_s20, %s848_s20   ;;  %s641_s19 = sphi %s697_s19, %s847_s19   ;;  %s637_s18 = sphi %s695_s18, %s846_s18  }
   0x5   : > { %s31_s26 = sadd.s32 1, %s653_s22  ;;  %s110_s27 = sadd.s32 1, %s645_s20 }
   0x6   : > { %p33_p0 = scmp.ge.s32.totalorder %s31_s26, 2  ;;  %p120_p1 = scmp.ne.s32.totalorder %s645_s20, %s641_s19 }
   0x7   : > { %p121_p2 = scmp.eq.s32.totalorder %s496_s24, 1  ;;  %p126_p3 = scmp.ne.s32.totalorder %s641_s19, %s637_s18 }
   0x8   : > { %s852_s26 = smov (%p33_p0, %s31_s26), 0  ;;  %p127_p5 = scmp.eq.s32.totalorder %s497_s25, 1 }
   0x9   : > { %p735_p4 = por %p121_p2, %p120_p1  ;;  %s105_s29 = ssub.s32 %s653_s22, %s852_s26 }
   0xa   : > { %p500_p6 = scmp.ge.s32.totalorder %s657_s23, 1  ;;  %p108_p7 = scmp.eq.s32.totalorder %s105_s29, 0 }
   0xb   : > { %p742_p8 = por %p127_p5, %p126_p3  ;;  %p206_p9 = scmp.lt.s32.totalorder %s657_s23, 3 }
   0xc   : > { %s748_s6 = scalar_select %p108_p7, %s645_s20, %s110_s27  }
   0xd   : > { %p207_p10 = pnand %p500_p6, %p206_p9 }
   0xe   : > { %s231_s7 = sand.u32 (!%p207_p10), 1, %s641_s19   ;;  %p239_p11 = scmp.lt.s32.totalorder (!%p207_p10), %s649_s21, 1 }
   0xf   : > { %210 = sbr.rel (%p207_p10) target bundleno = 326 (0x146), region = 32  ;;  %s501_s8 = sshll.u32 (!%p207_p10), %s231_s7, 4 }
  0x10   : > { %p249_p12 = scmp.eq.s32.totalorder (!%p207_p10), %s649_s21, 0  ;;  %s761_s14 = scalar_lea.vmem (!%p207_p10), [#allocation2], %s501_s8 }
  0x16   : > { %s240_s9 = scalar_select %p239_p11, %s649_s21, 1 }
  0x17   : > { %254 = sbr.rel (!%p249_p12) target bundleno = 30 (0x1e), region = 36  ;;  %vm255_vm0 = vcmask (%p249_p12), 7168   ;;  %v659_v0 = vmov (%p249_p12), 0.0  }
  0x18   : > { %s510_s10 = sshll.u32 %s240_s9, 3  ;;  %256 = vst.msk [vmem:[%s842_s4] sm:$0xff] (%p249_p12), %vm255_vm0, %v659_v0  ;;  %257 = vst.msk [vmem:[%s843_s5] sm:$0xff] (%p249_p12), %vm255_vm0, %v659_v0 }
  0x19   : > { %s759_s13 = scalar_lea.vmem %s838_s0, %s510_s10 }
  0x1e PF: > { %v259_v1 = vld [vmem:[%s839_s1] sm:$0xff]  ;;  %v660_v2 = vmov 0   ;;  %v661_v3 = vmov 2   ;;  %v662_v4 = vmov 1   ;;  %v663_v5 = vmov 3   ;;  %s512_s9 = sshll.u32 %s649_s21, 8 }
  0x1f   : > { %573 = vset.pattern.permute.xlu0 %v660_v2  ;;  %575 = vset.pattern.permute.xlu1 %v661_v3  ;;  %v364_v6 = vld [vmem:[%s840_s2] sm:$0xff]  ;;  %v266_v7 = vlaneseq  ;;  %s408_s10 = sshll.u32 %s761_s14, 4  ;;  %s392_s15 = scalar_lea.sflag [#allocation3], %s231_s7  ;;  %s409_s10 = int_to_ptr.vmem [resolvable:$true] %s408_s10 }
  0x20   : > { %262 = vperm.xlu0 %573, %v259_v1   ;;  %313 = vperm.xlu1 %575, %v259_v1   ;;  %v258_v13 = vld [vmem:[%s759_s13] sm:$0xff]  ;;  %s783_s13 = scalar_lea.hbm %s841_s3, %s512_s9  ;;  %s579_s16 = scalar_lea.vmem %s409_s10, 256 }
  0x21   : > { %v267_v8 = vshrl.u32 %v266_v7, 7  ;;  %p580_p13 = scmp.ne.s32.totalorder %s409_s10, %s579_s16  ;;  %s664_s17 = smov [#allocation2]  }
  0x22   : > { %s583_s24 = sshll.u32 %s664_s17, 4  ;;  %s584_s24 = int_to_ptr.vmem [resolvable:$false] %s583_s24 }
  0x23   : > { %v268_v9 = vsub.s32 0, %v267_v8  ;;  %v272_v10 = vsub.s32 4, %v267_v8  ;;  %v292_v11 = vsub.s32 1, %v267_v8  ;;  %v296_v12 = vsub.s32 5, %v267_v8  ;;  %p581_p0 = pnand %p580_p13, %p735_p4  ;;  %s585_s25 = scalar_lea.vmem %s584_s24, 512 }
  0x24   : > { %574 = vset.pattern.permute.xlu0 %v662_v4  ;;  %576 = vset.pattern.permute.xlu1 %v663_v5  ;;  %v318_v14 = vsub.s32 2, %v267_v8  ;;  %v322_v15 = vsub.s32 6, %v267_v8  ;;  %v344_v16 = vsub.s32 3, %v267_v8  ;;  %v348_v17 = vsub.s32 7, %v267_v8  ;;  %p586_p2 = scmp.lt.s32.totalorder %s409_s10, %s584_s24  ;;  %p587_p3 = scmp.lt.s32.totalorder %s585_s25, %s579_s16 }
  0x25   : > { %287 = vperm.xlu0 %574, %v259_v1   ;;  %339 = vperm.xlu1 %576, %v259_v1   ;;  %v269_v18 = vrot.slane %v258_v13, %v268_v9  ;;  %v273_v19 = vrot.slane %v258_v13, %v272_v10  ;;  %v293_v20 = vrot.slane %v258_v13, %v292_v11  ;;  %p582_p1 = pneg %p581_p0 }
  0x26   : > { %v297_v21 = vrot.slane %v258_v13, %v296_v12  ;;  %v319_v22 = vrot.slane %v258_v13, %v318_v14  ;;  %v323_v23 = vrot.slane %v258_v13, %v322_v15  ;;  %v345_v26 = vrot.slane %v258_v13, %v344_v16  ;;  %p588_p5 = por %p587_p3, %p586_p2 }
  0x27   : > { %v349_v27 = vrot.slane %v258_v13, %v348_v17  ;;  %v279_v28 = vrot.slane %v269_v18, %v268_v9  ;;  %v283_v29 = vrot.slane %v273_v19, %v268_v9  ;;  %v303_v30 = vrot.slane %v293_v20, %v292_v11 }
  0x28   : > { %v307_v31 = vrot.slane %v297_v21, %v292_v11  ;;  %v329_v32 = vrot.slane %v319_v22, %v318_v14  ;;  %v333_v33 = vrot.slane %v323_v23, %v318_v14  ;;  %v355_v34 = vrot.slane %v345_v26, %v344_v16  ;;  %p589_p6 = pnand %p588_p5, %p582_p1 }
  0x29   : > { %577 = vset.pattern.permute.xlu1 %v660_v2  ;;  %578 = vset.pattern.permute.xlu0 %v660_v2  ;;  %v359_v35 = vrot.slane %v349_v27, %v344_v16 }
  0x2a   : > { %367 = vperm.xlu1 %577, %v364_v6  }
  0x9f   : > { %v263_v24 = vpop.permute.xlu0 %262  ;;  %v314_v25 = vpop.permute.xlu1 %313 }
  0xa0   : > { %v284_v38 = vmul.f32 %v279_v28, %v263_v24  ;;  %v285_v39 = vmul.f32 %v283_v29, %v263_v24  ;;  %v334_v42 = vmul.f32 %v329_v32, %v314_v25  ;;  %v335_v43 = vmul.f32 %v333_v33, %v314_v25 }
  0xa4   : > { %v288_v36 = vpop.permute.xlu0 %287  ;;  %v340_v37 = vpop.permute.xlu1 %339 }
  0xa5   : > { %v308_v40 = vmul.f32 %v303_v30, %v288_v36  ;;  %v309_v41 = vmul.f32 %v307_v31, %v288_v36  ;;  %v360_v46 = vmul.f32 %v355_v34, %v340_v37  ;;  %v361_v47 = vmul.f32 %v359_v35, %v340_v37 }
  0xa7   : > { %v310_v44 = vadd.f32 %v308_v40, %v284_v38  ;;  %v311_v45 = vadd.f32 %v309_v41, %v285_v39 }
  0xa9   : > { %v336_v48 = vadd.f32 %v334_v42, %v310_v44  ;;  %v337_v49 = vadd.f32 %v335_v43, %v311_v45  ;;  %v368_v50 = vpop.permute.xlu1 %367 }
  0xab   : > { %v362_v51 = vadd.f32 %v360_v46, %v336_v48  ;;  %v363_v52 = vadd.f32 %v361_v47, %v337_v49 }
  0xad   : > { %v370_v53 = vadd.f32 %v368_v50, %v362_v51  ;;  %v371_v54 = vadd.f32 %v368_v50, %v363_v52 }
  0xaf   : > { %v372_v55 = vmax.f32 %v370_v53, 0.0  ;;  %v373_v56 = vmax.f32 %v371_v54, 0.0 }
  0xb1   : > { %374 = vst [vmem:[%s761_s14] sm:$0xff] %v372_v55  ;;  %375 = vst [vmem:[%s761_s14 + $0x8] sm:$0xff] %v373_v56  ;;  %v377_v57 = vadd.f32 %v373_v56, %v372_v55  ;;  %v384_v58 = vmul.f32 %v372_v55, %v372_v55  ;;  %v385_v59 = vmul.f32 %v373_v56, %v373_v56 }
  0xb3   : > { %378 = vadd.xlane.f32.xlu0 %v377_v57  ;;  %v386_v60 = vadd.f32 %v385_v59, %v384_v58 }
  0xb5   : > { %387 = vadd.xlane.f32.xlu1 %v386_v60 }
  0xb6   : > { %592 = shalt.err (!%p589_p6)
}
  0xb7   : > { %s593_s21 = scalar_lea.hbm %s783_s13, 256  ;;  %s597_s27 = scalar_lea.hbm %s841_s3, 512 }
  0xb8   : > { %p594_p7 = scmp.ne.s32.totalorder %s783_s13, %s593_s21  ;;  %p598_p11 = scmp.lt.u32.totalorder %s783_s13, %s841_s3 }
  0xb9   : > { %p599_p12 = scmp.lt.u32.totalorder %s597_s27, %s593_s21  ;;  %p601_p0 = scmp.lt.u32.totalorder %s593_s21, %s783_s13 }
  0xba   : > { %p595_p9 = pnand %p594_p7, %p735_p4 }
  0xbb   : > { %p600_p13 = por %p599_p12, %p598_p11 }
  0xbc   : > { %p596_p10 = pneg %p595_p9 }
  0xbd   : > { %p602_p1 = por %p601_p0, %p600_p13 }
  0xbf   : > { %p603_p2 = pnand %p602_p1, %p596_p10 }
  0xc1   : > { %606 = shalt.err (!%p603_p2)
}
  0xc2   : > { %513 = dma.vmem_to_hbm [thread:$0]  (%p735_p4), %s409_s10, 256, %s783_s13, %s392_s15   ;;  %v376_v61 = vld [vmem:[%s842_s4] sm:$0xff]  ;;  %vm381_vm1 = vcmask 7168  }
  0xc3   : > { %v383_v63 = vld [vmem:[%s843_s5] sm:$0xff] }
 0x140   : > { %v379_v62 = vpop.xlane.xlu0 %378 }
 0x141   : > { %v380_v0 = vadd.f32 %v379_v62, %v376_v61 }
 0x142   : > { %v388_v1 = vpop.xlane.xlu1 %387 }
 0x143   : > { %382 = vst.msk [vmem:[%s842_s4] sm:$0xff] %vm381_vm1, %v380_v0  ;;  %v389_v2 = vadd.f32 %v388_v1, %v383_v63 }
 0x145   : > { %390 = vst.msk [vmem:[%s843_s5] sm:$0xff] %vm381_vm1, %v389_v2 }
 0x146 PF: > { %p519_p4 = scmp.ge.s32.totalorder %s657_s23, 2  ;;  %s432_s10 = sand.u32 1, %s637_s18  }
 0x147   : > { %s433_s13 = scalar_lea.sflag [#allocation3], %s432_s10 }
 0x148   : > { %p516_p3 = pnand %p519_p4, %p742_p8 }
 0x14a   : > { %632 = dma.done.wait (!%p516_p3), %s433_s13, 256  }
 0x14b   : > { %634 = vsyncadd (!%p516_p3), %s433_s13, 4294967040  ;;  %s19_s23 = sadd.s32 1, %s657_s23   ;;  %s846_s18 = smov %s641_s19 }
 0x14c   : > { %p16_p5 = scmp.ge.s32.totalorder %s19_s23, 4   ;;  %s847_s19 = smov %s645_s20 }
 0x14d   : > { %s848_s20 = smov %s748_s6  ;;  %s849_s21 = smov %s653_s22 }
 0x14e   : > { %s850_s22 = smov %s852_s26  ;;  %18 = sbr.rel (!%p16_p5) target bundleno = 4 (0x4), region = 87 }
 0x155   :  { %438 = vsyncpa [#allocation3], 1 }
 0x156   :  { %440 = vsyncpa [#allocation3 + $0x1], 1 }

</bundles_post_ra>
